<compile_context>
chip_gen: v5e
topology: v5e:2x2
jax: 0.10.0
libtpu: 0.0.40
codegen_flags: <defaults>
</compile_context>

<pallas_src>
import math
import functools

import jax
import jax.numpy as jnp
from jax import lax
from jax.experimental import pallas as pl
from jax.experimental.pallas import tpu as pltpu


def _block_kernel(x_ref, ln1g_ref, ln1b_ref, wattn_ref, wcproj_ref,
                  ln2g_ref, ln2b_ref, wfc_ref, wfproj_ref, o_ref,
                  ycat_ref, *, n_heads, head_size, ffn_chunk):
    f32 = jnp.float32
    bf16 = jnp.bfloat16

    Bb, T, C = x_ref.shape
    R = Bb * T
    x = x_ref[...].reshape(R, C).astype(f32)                 # (R, C) f32

    # ---- LayerNorm 1 (f32 elementwise) ----
    mu = jnp.mean(x, axis=-1, keepdims=True)
    xc = x - mu
    var = jnp.mean(xc * xc, axis=-1, keepdims=True)
    h = xc * lax.rsqrt(var + 1e-5)
    h = h * ln1g_ref[...].astype(f32) + ln1b_ref[...].astype(f32)

    # ---- fused QKV projection: one lane-dense (R,C)@(C,3C) MXU matmul ----
    qkv = jnp.dot(h.astype(bf16), wattn_ref[...],
                  preferred_element_type=f32)                 # (R, 3C) f32
    scale = head_size ** -0.5
    q = qkv[:, :C] * scale                                    # fold 1/sqrt(hs) into q
    k = qkv[:, C:2 * C]
    v = qkv[:, 2 * C:]

    # causal mask, shared across heads / batch rows in the block
    row = lax.broadcasted_iota(jnp.int32, (T, T), 0)
    col = lax.broadcasted_iota(jnp.int32, (T, T), 1)
    causal = col <= row
    neg = jnp.float32(-1e30)                                  # finite (no inf-inf NaN risk)

    # ---- per (batch-in-block, head) causal attention; heads write disjoint lane slices ----
    # TODO(synk): for many-head configs / T >= 2048 switch to lax.fori_loop + flash-style
    #             KV tiling to bound vreg/VMEM live ranges (v7x 64 MiB VMEM).
    for b in range(Bb):
        r0 = b * T
        for hd in range(n_heads):
            s = hd * head_size
            qh = q[r0:r0 + T, s:s + head_size].astype(bf16)   # (T, hs)
            kh = k[r0:r0 + T, s:s + head_size].astype(bf16)   # (T, hs)
            vh = v[r0:r0 + T, s:s + head_size].astype(bf16)   # (T, hs)

            # contract last dims of q and k (no explicit transpose through the XLU)
            att = lax.dot_general(qh, kh, (((1,), (1,)), ((), ())),
                                  preferred_element_type=f32)         # (T, T)
            att = jnp.where(causal, att, neg)
            att = att - jnp.max(att, axis=-1, keepdims=True)          # stable softmax (f32)
            p = jnp.exp(att)
            p = p * pl.reciprocal(jnp.sum(p, axis=-1, keepdims=True), approx=True)

            yh = jnp.dot(p.astype(bf16), vh, preferred_element_type=f32)   # (T, hs)
            ycat_ref[r0:r0 + T, s:s + head_size] = yh

    # ---- single output projection with full K=C MXU utilization ----
    y = jnp.dot(ycat_ref[...].astype(bf16), wcproj_ref[...],
                preferred_element_type=f32)                   # (R, C)
    x1 = x + y                                                # residual 1

    # ---- LayerNorm 2 ----
    mu2 = jnp.mean(x1, axis=-1, keepdims=True)
    xc2 = x1 - mu2
    var2 = jnp.mean(xc2 * xc2, axis=-1, keepdims=True)
    h2 = xc2 * lax.rsqrt(var2 + 1e-5)
    h2 = h2 * ln2g_ref[...].astype(f32) + ln2b_ref[...].astype(f32)
    h2b = h2.astype(bf16)

    # ---- FeedForward: c_fc -> new_gelu -> c_proj, chunked over the 4C hidden dim ----
    hidden = wfc_ref.shape[1]
    cst = math.sqrt(2.0 / math.pi)
    y2 = jnp.zeros((R, C), f32)
    for c0 in range(0, hidden, ffn_chunk):
        c1 = min(c0 + ffn_chunk, hidden)
        a = jnp.dot(h2b, wfc_ref[:, c0:c1], preferred_element_type=f32)    # (R, chunk)
        g = 0.5 * a * (1.0 + jnp.tanh(cst * (a + 0.044715 * (a * a * a))))
        y2 = y2 + jnp.dot(g.astype(bf16), wfproj_ref[c0:c1, :],
                          preferred_element_type=f32)                      # (R, C)

    o_ref[...] = (x1 + y2).reshape(Bb, T, C).astype(o_ref.dtype)  # residual 2, lane-dense


def transformer_block(x, ln1_g, ln1_b, w_attn, w_cproj,
                      ln2_g, ln2_b, w_fc, w_fproj, *, n_heads,
                      batch_block=None, interpret=False):
    """x: (B, T, C). All Linear weights are stored in (in, out) orientation
       (i.e. transposed vs PyTorch nn.Linear's (out, in)):
       w_attn (C, 3C), w_cproj (C, C), w_fc (C, 4C), w_fproj (4C, C)."""
    B, T, C = x.shape
    assert C % n_heads == 0
    hs = C // n_heads
    assert w_attn.shape == (C, 3 * C)
    assert w_cproj.shape == (C, C)
    assert w_fc.shape == (C, 4 * C)
    assert w_fproj.shape == (4 * C, C)

    # ---- choose how many batch rows to fold per grid step ----
    if batch_block is None:
        row_target = 256                       # fill MXU M on v6e/v7x (>=128 also covers v5e)
        bblk = max(1, row_target // max(T, 1))
        bblk = min(bblk, B)
        if B >= 2:                             # keep >= 2 grid steps for v7x's 2 TensorCores
            bblk = min(bblk, max(1, B // 2))
        while B % bblk:
            bblk -= 1
    else:
        bblk = batch_block
    assert B % bblk == 0
    n_steps = B // bblk

    hidden = 4 * C
    ffn_chunk = hidden if hidden <= 2048 else 2048

    # ---- weights shipped as bf16 (half the DMA bytes / VMEM residency) ----
    bf16 = jnp.bfloat16
    w_attn_b = w_attn.astype(bf16)
    w_cproj_b = w_cproj.astype(bf16)
    w_fc_b = w_fc.astype(bf16)
    w_fproj_b = w_fproj.astype(bf16)
    ln1_g2 = ln1_g.reshape(1, C).astype(jnp.float32)
    ln1_b2 = ln1_b.reshape(1, C).astype(jnp.float32)
    ln2_g2 = ln2_g.reshape(1, C).astype(jnp.float32)
    ln2_b2 = ln2_b.reshape(1, C).astype(jnp.float32)

    kernel = functools.partial(_block_kernel, n_heads=n_heads, head_size=hs,
                               ffn_chunk=ffn_chunk)

    # constant-index inputs: single-buffered (double-buffering buys nothing for them)
    def const_spec(shape):
        return pl.BlockSpec(shape, lambda b: (0,) * len(shape),
                            pipeline_mode=pl.Buffered(1))

    # explicit scoped-VMEM budget: bf16 single-buffered weights + f32 activations + margin
    R = bblk * T
    weight_bytes = (3 * C * C + C * C + C * hidden + hidden * C) * 2
    io_bytes = 2 * (2 * bblk * T * C * x.dtype.itemsize)           # x + out, double-buffered
    act_bytes = (R * 3 * C + 5 * R * C + 2 * R * ffn_chunk + 3 * T * T) * 4
    vmem_limit = int(min(56 << 20, max(32 << 20, weight_bytes + io_bytes + 2 * act_bytes)))

    return pl.pallas_call(
        kernel,
        out_shape=jax.ShapeDtypeStruct((B, T, C), x.dtype),
        grid_spec=pltpu.PrefetchScalarGridSpec(
            num_scalar_prefetch=0,
            grid=(n_steps,),
            in_specs=[
                pl.BlockSpec((bblk, T, C), lambda b: (b, 0, 0)),    # x
                const_spec((1, C)), const_spec((1, C)),             # ln1 gamma/beta
                const_spec((C, 3 * C)),                             # c_attn (bf16)
                const_spec((C, C)),                                 # attn c_proj (bf16)
                const_spec((1, C)), const_spec((1, C)),             # ln2 gamma/beta
                const_spec((C, 4 * C)),                             # ffn c_fc (bf16)
                const_spec((4 * C, C)),                             # ffn c_proj (bf16)
            ],
            out_specs=pl.BlockSpec((bblk, T, C), lambda b: (b, 0, 0)),
            scratch_shapes=[pltpu.VMEM((bblk * T, C), jnp.float32)],   # head-concat buffer
        ),
        compiler_params=pltpu.CompilerParams(
            dimension_semantics=("parallel",),
            vmem_limit_bytes=vmem_limit),
        interpret=interpret,
    )(x, ln1_g2, ln1_b2, w_attn_b, w_cproj_b, ln2_g2, ln2_b2, w_fc_b, w_fproj_b)


def _reference(x, ln1_g, ln1_b, w_attn, w_cproj, ln2_g, ln2_b, w_fc, w_fproj, n_heads):
    """Pure-JAX reference matching the PyTorch Block.forward (eval mode, mask=None)."""
    B, T, C = x.shape
    hs = C // n_heads

    def ln(z, g, b):
        mu = jnp.mean(z, axis=-1, keepdims=True)
        var = jnp.mean((z - mu) ** 2, axis=-1, keepdims=True)
        return (z - mu) / jnp.sqrt(var + 1e-5) * g + b

    h = ln(x, ln1_g, ln1_b)
    qkv = h @ w_attn
    q, k, v = jnp.split(qkv, 3, axis=-1)
    q = q.reshape(B, T, n_heads, hs).transpose(0, 2, 1, 3)
    k = k.reshape(B, T, n_heads, hs).transpose(0, 2, 1, 3)
    v = v.reshape(B, T, n_heads, hs).transpose(0, 2, 1, 3)
    att = (q @ jnp.swapaxes(k, -2, -1)) * (1.0 / math.sqrt(hs))
    tril = jnp.tril(jnp.ones((T, T)))
    att = jnp.where(tril == 0, -jnp.inf, att)
    att = jax.nn.softmax(att, axis=-1)
    y = (att @ v).transpose(0, 2, 1, 3).reshape(B, T, C)
    x1 = x + y @ w_cproj
    h2 = ln(x1, ln2_g, ln2_b)
    a = h2 @ w_fc
    gelu = 0.5 * a * (1.0 + jnp.tanh(math.sqrt(2.0 / math.pi) * (a + 0.044715 * a ** 3)))
    return x1 + gelu @ w_fproj


if __name__ == "__main__":
    # Small config consistent with the module.
    B, T = 2, 8                      # batch, block_size (seq len)
    n_heads, head_size = 4, 8
    C = n_heads * head_size          # n_embd = 32

    key = jax.random.PRNGKey(0)
    ks = jax.random.split(key, 9)

    x = jax.random.normal(ks[0], (B, T, C), jnp.float32)

    s_in = 1.0 / math.sqrt(C)
    s_fc = 1.0 / math.sqrt(4 * C)
    # nn.Linear(in, out, bias=False): y = x @ W.T -> store weights in (in, out) orientation.
    w_attn = jax.random.uniform(ks[1], (C, 3 * C), jnp.float32, -s_in, s_in)
    w_cproj = jax.random.uniform(ks[2], (C, C), jnp.float32, -s_in, s_in)
    w_fc = jax.random.uniform(ks[3], (C, 4 * C), jnp.float32, -s_in, s_in)
    w_fproj = jax.random.uniform(ks[4], (4 * C, C), jnp.float32, -s_fc, s_fc)
    # LayerNorm affine params (non-trivial so they are actually exercised).
    ln1_g = 1.0 + 0.1 * jax.random.normal(ks[5], (C,), jnp.float32)
    ln1_b = 0.1 * jax.random.normal(ks[6], (C,), jnp.float32)
    ln2_g = 1.0 + 0.1 * jax.random.normal(ks[7], (C,), jnp.float32)
    ln2_b = 0.1 * jax.random.normal(ks[8], (C,), jnp.float32)

    out = transformer_block(x, ln1_g, ln1_b, w_attn, w_cproj,
                            ln2_g, ln2_b, w_fc, w_fproj, n_heads=n_heads)
    out = jax.block_until_ready(out)

    ref = _reference(x, ln1_g, ln1_b, w_attn, w_cproj,
                     ln2_g, ln2_b, w_fc, w_fproj, n_heads)

    assert out.shape == (B, T, C)
    # bf16 MXU operands + approx reciprocal => looser tolerance vs the f32 reference.
    max_err = float(jnp.max(jnp.abs(out - ref)))
    assert jnp.allclose(out, ref, atol=2e-2, rtol=2e-2), (
        f"mismatch vs reference, max abs err = {max_err}")

    print("KERNEL_OK")
</pallas_src>

<mosaic_0001>
module attributes {stable_mosaic.version = 11 : i64} {
  func.func @_block_kernel(%arg0: i32, %arg1: memref<1x8x32xf32, #tpu.memory_space<vmem>>, %arg2: memref<1x32xf32, #tpu.memory_space<vmem>>, %arg3: memref<1x32xf32, #tpu.memory_space<vmem>>, %arg4: memref<32x96xbf16, #tpu.memory_space<vmem>>, %arg5: memref<32x32xbf16, #tpu.memory_space<vmem>>, %arg6: memref<1x32xf32, #tpu.memory_space<vmem>>, %arg7: memref<1x32xf32, #tpu.memory_space<vmem>>, %arg8: memref<32x128xbf16, #tpu.memory_space<vmem>>, %arg9: memref<128x32xbf16, #tpu.memory_space<vmem>>, %arg10: memref<1x8x32xf32, #tpu.memory_space<vmem>>, %arg11: memref<8x32xf32, #tpu.memory_space<vmem>>) attributes {dimension_semantics = [#tpu.dimension_semantics<parallel>], iteration_bounds = array<i64: 2>, scalar_prefetch = 0 : i64, scratch_operands = 1 : i64, tpu.core_type = #tpu.core_type<tc>, window_params = [{transform_indices = @transform_0, window_bounds = array<i64: 1, 8, 32>}, {pipeline_mode = #tpu.pipeline_mode<synchronous>, transform_indices = @transform_1, window_bounds = array<i64: 1, 32>}, {pipeline_mode = #tpu.pipeline_mode<synchronous>, transform_indices = @transform_2, window_bounds = array<i64: 1, 32>}, {pipeline_mode = #tpu.pipeline_mode<synchronous>, transform_indices = @transform_3, window_bounds = array<i64: 32, 96>}, {pipeline_mode = #tpu.pipeline_mode<synchronous>, transform_indices = @transform_4, window_bounds = array<i64: 32, 32>}, {pipeline_mode = #tpu.pipeline_mode<synchronous>, transform_indices = @transform_5, window_bounds = array<i64: 1, 32>}, {pipeline_mode = #tpu.pipeline_mode<synchronous>, transform_indices = @transform_6, window_bounds = array<i64: 1, 32>}, {pipeline_mode = #tpu.pipeline_mode<synchronous>, transform_indices = @transform_7, window_bounds = array<i64: 32, 128>}, {pipeline_mode = #tpu.pipeline_mode<synchronous>, transform_indices = @transform_8, window_bounds = array<i64: 128, 32>}, {transform_indices = @transform_9, window_bounds = array<i64: 1, 8, 32>}]} {
    %c0 = arith.constant 0 : index
    %c0_0 = arith.constant 0 : index
    %c0_1 = arith.constant 0 : index
    %0 = vector.load %arg1[%c0, %c0_0, %c0_1] : memref<1x8x32xf32, #tpu.memory_space<vmem>>, vector<1x8x32xf32>
    %1 = vector.shape_cast %0 : vector<1x8x32xf32> to vector<8x32xf32>
    %cst = arith.constant dense<0.000000e+00> : vector<8xf32>
    %2 = vector.multi_reduction <add>, %1, %cst [1] : vector<8x32xf32> to vector<8xf32>
    %3 = vector.shape_cast %2 : vector<8xf32> to vector<8x1xf32>
    %cst_2 = arith.constant 3.200000e+01 : f32
    %4 = vector.broadcast %cst_2 : f32 to vector<8x1xf32>
    %5 = arith.divf %3, %4 : vector<8x1xf32>
    %6 = vector.broadcast %5 : vector<8x1xf32> to vector<8x32xf32>
    %7 = arith.subf %1, %6 : vector<8x32xf32>
    %8 = arith.mulf %7, %7 : vector<8x32xf32>
    %cst_3 = arith.constant dense<0.000000e+00> : vector<8xf32>
    %9 = vector.multi_reduction <add>, %8, %cst_3 [1] : vector<8x32xf32> to vector<8xf32>
    %10 = vector.shape_cast %9 : vector<8xf32> to vector<8x1xf32>
    %cst_4 = arith.constant 3.200000e+01 : f32
    %11 = vector.broadcast %cst_4 : f32 to vector<8x1xf32>
    %12 = arith.divf %10, %11 : vector<8x1xf32>
    %cst_5 = arith.constant 9.99999974E-6 : f32
    %13 = vector.broadcast %cst_5 : f32 to vector<8x1xf32>
    %14 = arith.addf %12, %13 : vector<8x1xf32>
    %15 = math.rsqrt %14 : vector<8x1xf32>
    %16 = vector.broadcast %15 : vector<8x1xf32> to vector<8x32xf32>
    %17 = arith.mulf %7, %16 : vector<8x32xf32>
    %c0_6 = arith.constant 0 : index
    %c0_7 = arith.constant 0 : index
    %18 = vector.load %arg2[%c0_6, %c0_7] : memref<1x32xf32, #tpu.memory_space<vmem>>, vector<1x32xf32>
    %19 = vector.broadcast %18 : vector<1x32xf32> to vector<8x32xf32>
    %20 = arith.mulf %17, %19 : vector<8x32xf32>
    %c0_8 = arith.constant 0 : index
    %c0_9 = arith.constant 0 : index
    %21 = vector.load %arg3[%c0_8, %c0_9] : memref<1x32xf32, #tpu.memory_space<vmem>>, vector<1x32xf32>
    %22 = vector.broadcast %21 : vector<1x32xf32> to vector<8x32xf32>
    %23 = arith.addf %20, %22 : vector<8x32xf32>
    %24 = arith.truncf %23 : vector<8x32xf32> to vector<8x32xbf16>
    %c0_10 = arith.constant 0 : index
    %c0_11 = arith.constant 0 : index
    %25 = vector.load %arg4[%c0_10, %c0_11] : memref<32x96xbf16, #tpu.memory_space<vmem>>, vector<32x96xbf16>
    %cst_12 = arith.constant dense<0.000000e+00> : vector<8x96xf32>
    %26 = tpu.matmul %24, %25, %cst_12 {dimension_numbers = #tpu.dot_dimension_numbers<[1], [0], [0], [1], [0, 0, 1, 1], [], []>} : vector<8x32xbf16>, vector<32x96xbf16>, vector<8x96xf32> -> vector<8x96xf32>
    %27 = vector.extract_strided_slice %26 {offsets = [0, 0], sizes = [8, 32], strides = [1, 1]} : vector<8x96xf32> to vector<8x32xf32>
    %cst_13 = arith.constant 0.353553385 : f32
    %28 = vector.broadcast %cst_13 : f32 to vector<8x32xf32>
    %29 = arith.mulf %27, %28 : vector<8x32xf32>
    %30 = vector.extract_strided_slice %26 {offsets = [0, 32], sizes = [8, 32], strides = [1, 1]} : vector<8x96xf32> to vector<8x32xf32>
    %31 = vector.extract_strided_slice %26 {offsets = [0, 64], sizes = [8, 32], strides = [1, 1]} : vector<8x96xf32> to vector<8x32xf32>
    %32 = tpu.iota {dimensions = array<i32: 0>} : vector<8x8xi32>
    %33 = tpu.iota {dimensions = array<i32: 1>} : vector<8x8xi32>
    %34 = arith.cmpi sle, %33, %32 : vector<8x8xi32>
    %35 = vector.extract_strided_slice %29 {offsets = [0, 0], sizes = [8, 8], strides = [1, 1]} : vector<8x32xf32> to vector<8x8xf32>
    %36 = arith.truncf %35 : vector<8x8xf32> to vector<8x8xbf16>
    %37 = vector.extract_strided_slice %30 {offsets = [0, 0], sizes = [8, 8], strides = [1, 1]} : vector<8x32xf32> to vector<8x8xf32>
    %38 = arith.truncf %37 : vector<8x8xf32> to vector<8x8xbf16>
    %39 = vector.extract_strided_slice %31 {offsets = [0, 0], sizes = [8, 8], strides = [1, 1]} : vector<8x32xf32> to vector<8x8xf32>
    %40 = arith.truncf %39 : vector<8x8xf32> to vector<8x8xbf16>
    %cst_14 = arith.constant dense<0.000000e+00> : vector<8x8xf32>
    %41 = tpu.matmul %36, %38, %cst_14 {dimension_numbers = #tpu.dot_dimension_numbers<[1], [1], [0], [0], [0, 0, 1, 0], [], []>} : vector<8x8xbf16>, vector<8x8xbf16>, vector<8x8xf32> -> vector<8x8xf32>
    %cst_15 = arith.constant -1.000000e+30 : f32
    %42 = vector.broadcast %cst_15 : f32 to vector<8x8xf32>
    %43 = arith.select %34, %41, %42 : vector<8x8xi1>, vector<8x8xf32>
    %cst_16 = arith.constant dense<0xFF800000> : vector<8xf32>
    %44 = vector.multi_reduction <maximumf>, %43, %cst_16 [1] : vector<8x8xf32> to vector<8xf32>
    %45 = vector.shape_cast %44 : vector<8xf32> to vector<8x1xf32>
    %46 = vector.broadcast %45 : vector<8x1xf32> to vector<8x8xf32>
    %47 = arith.subf %43, %46 : vector<8x8xf32>
    %48 = math.exp %47 : vector<8x8xf32>
    %cst_17 = arith.constant dense<0.000000e+00> : vector<8xf32>
    %49 = vector.multi_reduction <add>, %48, %cst_17 [1] : vector<8x8xf32> to vector<8xf32>
    %50 = vector.shape_cast %49 : vector<8xf32> to vector<8x1xf32>
    %51 = tpu.reciprocal %50 {approx = true} : vector<8x1xf32> -> vector<8x1xf32>
    %52 = vector.broadcast %51 : vector<8x1xf32> to vector<8x8xf32>
    %53 = arith.mulf %48, %52 : vector<8x8xf32>
    %54 = arith.truncf %53 : vector<8x8xf32> to vector<8x8xbf16>
    %cst_18 = arith.constant dense<0.000000e+00> : vector<8x8xf32>
    %55 = tpu.matmul %54, %40, %cst_18 {dimension_numbers = #tpu.dot_dimension_numbers<[1], [0], [0], [1], [0, 0, 1, 1], [], []>} : vector<8x8xbf16>, vector<8x8xbf16>, vector<8x8xf32> -> vector<8x8xf32>
    %c0_19 = arith.constant 0 : index
    %c0_20 = arith.constant 0 : index
    %56 = vector.load %arg11[%c0_19, %c0_20] : memref<8x32xf32, #tpu.memory_space<vmem>>, vector<8x8xf32>
    tpu.vector_store %arg11[%c0_19, %c0_20], %55 {strides = array<i32>} : memref<8x32xf32, #tpu.memory_space<vmem>>, vector<8x8xf32>,
    %57 = vector.extract_strided_slice %29 {offsets = [0, 8], sizes = [8, 8], strides = [1, 1]} : vector<8x32xf32> to vector<8x8xf32>
    %58 = arith.truncf %57 : vector<8x8xf32> to vector<8x8xbf16>
    %59 = vector.extract_strided_slice %30 {offsets = [0, 8], sizes = [8, 8], strides = [1, 1]} : vector<8x32xf32> to vector<8x8xf32>
    %60 = arith.truncf %59 : vector<8x8xf32> to vector<8x8xbf16>
    %61 = vector.extract_strided_slice %31 {offsets = [0, 8], sizes = [8, 8], strides = [1, 1]} : vector<8x32xf32> to vector<8x8xf32>
    %62 = arith.truncf %61 : vector<8x8xf32> to vector<8x8xbf16>
    %cst_21 = arith.constant dense<0.000000e+00> : vector<8x8xf32>
    %63 = tpu.matmul %58, %60, %cst_21 {dimension_numbers = #tpu.dot_dimension_numbers<[1], [1], [0], [0], [0, 0, 1, 0], [], []>} : vector<8x8xbf16>, vector<8x8xbf16>, vector<8x8xf32> -> vector<8x8xf32>
    %cst_22 = arith.constant -1.000000e+30 : f32
    %64 = vector.broadcast %cst_22 : f32 to vector<8x8xf32>
    %65 = arith.select %34, %63, %64 : vector<8x8xi1>, vector<8x8xf32>
    %cst_23 = arith.constant dense<0xFF800000> : vector<8xf32>
    %66 = vector.multi_reduction <maximumf>, %65, %cst_23 [1] : vector<8x8xf32> to vector<8xf32>
    %67 = vector.shape_cast %66 : vector<8xf32> to vector<8x1xf32>
    %68 = vector.broadcast %67 : vector<8x1xf32> to vector<8x8xf32>
    %69 = arith.subf %65, %68 : vector<8x8xf32>
    %70 = math.exp %69 : vector<8x8xf32>
    %cst_24 = arith.constant dense<0.000000e+00> : vector<8xf32>
    %71 = vector.multi_reduction <add>, %70, %cst_24 [1] : vector<8x8xf32> to vector<8xf32>
    %72 = vector.shape_cast %71 : vector<8xf32> to vector<8x1xf32>
    %73 = tpu.reciprocal %72 {approx = true} : vector<8x1xf32> -> vector<8x1xf32>
    %74 = vector.broadcast %73 : vector<8x1xf32> to vector<8x8xf32>
    %75 = arith.mulf %70, %74 : vector<8x8xf32>
    %76 = arith.truncf %75 : vector<8x8xf32> to vector<8x8xbf16>
    %cst_25 = arith.constant dense<0.000000e+00> : vector<8x8xf32>
    %77 = tpu.matmul %76, %62, %cst_25 {dimension_numbers = #tpu.dot_dimension_numbers<[1], [0], [0], [1], [0, 0, 1, 1], [], []>} : vector<8x8xbf16>, vector<8x8xbf16>, vector<8x8xf32> -> vector<8x8xf32>
    %c0_26 = arith.constant 0 : index
    %c8 = arith.constant 8 : index
    %78 = vector.load %arg11[%c0_26, %c8] : memref<8x32xf32, #tpu.memory_space<vmem>>, vector<8x8xf32>
    tpu.vector_store %arg11[%c0_26, %c8], %77 {strides = array<i32>} : memref<8x32xf32, #tpu.memory_space<vmem>>, vector<8x8xf32>,
    %79 = vector.extract_strided_slice %29 {offsets = [0, 16], sizes = [8, 8], strides = [1, 1]} : vector<8x32xf32> to vector<8x8xf32>
    %80 = arith.truncf %79 : vector<8x8xf32> to vector<8x8xbf16>
    %81 = vector.extract_strided_slice %30 {offsets = [0, 16], sizes = [8, 8], strides = [1, 1]} : vector<8x32xf32> to vector<8x8xf32>
    %82 = arith.truncf %81 : vector<8x8xf32> to vector<8x8xbf16>
    %83 = vector.extract_strided_slice %31 {offsets = [0, 16], sizes = [8, 8], strides = [1, 1]} : vector<8x32xf32> to vector<8x8xf32>
    %84 = arith.truncf %83 : vector<8x8xf32> to vector<8x8xbf16>
    %cst_27 = arith.constant dense<0.000000e+00> : vector<8x8xf32>
    %85 = tpu.matmul %80, %82, %cst_27 {dimension_numbers = #tpu.dot_dimension_numbers<[1], [1], [0], [0], [0, 0, 1, 0], [], []>} : vector<8x8xbf16>, vector<8x8xbf16>, vector<8x8xf32> -> vector<8x8xf32>
    %cst_28 = arith.constant -1.000000e+30 : f32
    %86 = vector.broadcast %cst_28 : f32 to vector<8x8xf32>
    %87 = arith.select %34, %85, %86 : vector<8x8xi1>, vector<8x8xf32>
    %cst_29 = arith.constant dense<0xFF800000> : vector<8xf32>
    %88 = vector.multi_reduction <maximumf>, %87, %cst_29 [1] : vector<8x8xf32> to vector<8xf32>
    %89 = vector.shape_cast %88 : vector<8xf32> to vector<8x1xf32>
    %90 = vector.broadcast %89 : vector<8x1xf32> to vector<8x8xf32>
    %91 = arith.subf %87, %90 : vector<8x8xf32>
    %92 = math.exp %91 : vector<8x8xf32>
    %cst_30 = arith.constant dense<0.000000e+00> : vector<8xf32>
    %93 = vector.multi_reduction <add>, %92, %cst_30 [1] : vector<8x8xf32> to vector<8xf32>
    %94 = vector.shape_cast %93 : vector<8xf32> to vector<8x1xf32>
    %95 = tpu.reciprocal %94 {approx = true} : vector<8x1xf32> -> vector<8x1xf32>
    %96 = vector.broadcast %95 : vector<8x1xf32> to vector<8x8xf32>
    %97 = arith.mulf %92, %96 : vector<8x8xf32>
    %98 = arith.truncf %97 : vector<8x8xf32> to vector<8x8xbf16>
    %cst_31 = arith.constant dense<0.000000e+00> : vector<8x8xf32>
    %99 = tpu.matmul %98, %84, %cst_31 {dimension_numbers = #tpu.dot_dimension_numbers<[1], [0], [0], [1], [0, 0, 1, 1], [], []>} : vector<8x8xbf16>, vector<8x8xbf16>, vector<8x8xf32> -> vector<8x8xf32>
    %c0_32 = arith.constant 0 : index
    %c16 = arith.constant 16 : index
    %100 = vector.load %arg11[%c0_32, %c16] : memref<8x32xf32, #tpu.memory_space<vmem>>, vector<8x8xf32>
    tpu.vector_store %arg11[%c0_32, %c16], %99 {strides = array<i32>} : memref<8x32xf32, #tpu.memory_space<vmem>>, vector<8x8xf32>,
    %101 = vector.extract_strided_slice %29 {offsets = [0, 24], sizes = [8, 8], strides = [1, 1]} : vector<8x32xf32> to vector<8x8xf32>
    %102 = arith.truncf %101 : vector<8x8xf32> to vector<8x8xbf16>
    %103 = vector.extract_strided_slice %30 {offsets = [0, 24], sizes = [8, 8], strides = [1, 1]} : vector<8x32xf32> to vector<8x8xf32>
    %104 = arith.truncf %103 : vector<8x8xf32> to vector<8x8xbf16>
    %105 = vector.extract_strided_slice %31 {offsets = [0, 24], sizes = [8, 8], strides = [1, 1]} : vector<8x32xf32> to vector<8x8xf32>
    %106 = arith.truncf %105 : vector<8x8xf32> to vector<8x8xbf16>
    %cst_33 = arith.constant dense<0.000000e+00> : vector<8x8xf32>
    %107 = tpu.matmul %102, %104, %cst_33 {dimension_numbers = #tpu.dot_dimension_numbers<[1], [1], [0], [0], [0, 0, 1, 0], [], []>} : vector<8x8xbf16>, vector<8x8xbf16>, vector<8x8xf32> -> vector<8x8xf32>
    %cst_34 = arith.constant -1.000000e+30 : f32
    %108 = vector.broadcast %cst_34 : f32 to vector<8x8xf32>
    %109 = arith.select %34, %107, %108 : vector<8x8xi1>, vector<8x8xf32>
    %cst_35 = arith.constant dense<0xFF800000> : vector<8xf32>
    %110 = vector.multi_reduction <maximumf>, %109, %cst_35 [1] : vector<8x8xf32> to vector<8xf32>
    %111 = vector.shape_cast %110 : vector<8xf32> to vector<8x1xf32>
    %112 = vector.broadcast %111 : vector<8x1xf32> to vector<8x8xf32>
    %113 = arith.subf %109, %112 : vector<8x8xf32>
    %114 = math.exp %113 : vector<8x8xf32>
    %cst_36 = arith.constant dense<0.000000e+00> : vector<8xf32>
    %115 = vector.multi_reduction <add>, %114, %cst_36 [1] : vector<8x8xf32> to vector<8xf32>
    %116 = vector.shape_cast %115 : vector<8xf32> to vector<8x1xf32>
    %117 = tpu.reciprocal %116 {approx = true} : vector<8x1xf32> -> vector<8x1xf32>
    %118 = vector.broadcast %117 : vector<8x1xf32> to vector<8x8xf32>
    %119 = arith.mulf %114, %118 : vector<8x8xf32>
    %120 = arith.truncf %119 : vector<8x8xf32> to vector<8x8xbf16>
    %cst_37 = arith.constant dense<0.000000e+00> : vector<8x8xf32>
    %121 = tpu.matmul %120, %106, %cst_37 {dimension_numbers = #tpu.dot_dimension_numbers<[1], [0], [0], [1], [0, 0, 1, 1], [], []>} : vector<8x8xbf16>, vector<8x8xbf16>, vector<8x8xf32> -> vector<8x8xf32>
    %c0_38 = arith.constant 0 : index
    %c24 = arith.constant 24 : index
    %122 = vector.load %arg11[%c0_38, %c24] : memref<8x32xf32, #tpu.memory_space<vmem>>, vector<8x8xf32>
    tpu.vector_store %arg11[%c0_38, %c24], %121 {strides = array<i32>} : memref<8x32xf32, #tpu.memory_space<vmem>>, vector<8x8xf32>,
    %c0_39 = arith.constant 0 : index
    %c0_40 = arith.constant 0 : index
    %123 = vector.load %arg11[%c0_39, %c0_40] : memref<8x32xf32, #tpu.memory_space<vmem>>, vector<8x32xf32>
    %124 = arith.truncf %123 : vector<8x32xf32> to vector<8x32xbf16>
    %c0_41 = arith.constant 0 : index
    %c0_42 = arith.constant 0 : index
    %125 = vector.load %arg5[%c0_41, %c0_42] : memref<32x32xbf16, #tpu.memory_space<vmem>>, vector<32x32xbf16>
    %cst_43 = arith.constant dense<0.000000e+00> : vector<8x32xf32>
    %126 = tpu.matmul %124, %125, %cst_43 {dimension_numbers = #tpu.dot_dimension_numbers<[1], [0], [0], [1], [0, 0, 1, 1], [], []>} : vector<8x32xbf16>, vector<32x32xbf16>, vector<8x32xf32> -> vector<8x32xf32>
    %127 = arith.addf %1, %126 : vector<8x32xf32>
    %cst_44 = arith.constant dense<0.000000e+00> : vector<8xf32>
    %128 = vector.multi_reduction <add>, %127, %cst_44 [1] : vector<8x32xf32> to vector<8xf32>
    %129 = vector.shape_cast %128 : vector<8xf32> to vector<8x1xf32>
    %cst_45 = arith.constant 3.200000e+01 : f32
    %130 = vector.broadcast %cst_45 : f32 to vector<8x1xf32>
    %131 = arith.divf %129, %130 : vector<8x1xf32>
    %132 = vector.broadcast %131 : vector<8x1xf32> to vector<8x32xf32>
    %133 = arith.subf %127, %132 : vector<8x32xf32>
    %134 = arith.mulf %133, %133 : vector<8x32xf32>
    %cst_46 = arith.constant dense<0.000000e+00> : vector<8xf32>
    %135 = vector.multi_reduction <add>, %134, %cst_46 [1] : vector<8x32xf32> to vector<8xf32>
    %136 = vector.shape_cast %135 : vector<8xf32> to vector<8x1xf32>
    %cst_47 = arith.constant 3.200000e+01 : f32
    %137 = vector.broadcast %cst_47 : f32 to vector<8x1xf32>
    %138 = arith.divf %136, %137 : vector<8x1xf32>
    %cst_48 = arith.constant 9.99999974E-6 : f32
    %139 = vector.broadcast %cst_48 : f32 to vector<8x1xf32>
    %140 = arith.addf %138, %139 : vector<8x1xf32>
    %141 = math.rsqrt %140 : vector<8x1xf32>
    %142 = vector.broadcast %141 : vector<8x1xf32> to vector<8x32xf32>
    %143 = arith.mulf %133, %142 : vector<8x32xf32>
    %c0_49 = arith.constant 0 : index
    %c0_50 = arith.constant 0 : index
    %144 = vector.load %arg6[%c0_49, %c0_50] : memref<1x32xf32, #tpu.memory_space<vmem>>, vector<1x32xf32>
    %145 = vector.broadcast %144 : vector<1x32xf32> to vector<8x32xf32>
    %146 = arith.mulf %143, %145 : vector<8x32xf32>
    %c0_51 = arith.constant 0 : index
    %c0_52 = arith.constant 0 : index
    %147 = vector.load %arg7[%c0_51, %c0_52] : memref<1x32xf32, #tpu.memory_space<vmem>>, vector<1x32xf32>
    %148 = vector.broadcast %147 : vector<1x32xf32> to vector<8x32xf32>
    %149 = arith.addf %146, %148 : vector<8x32xf32>
    %150 = arith.truncf %149 : vector<8x32xf32> to vector<8x32xbf16>
    %cst_53 = arith.constant 0.000000e+00 : f32
    %151 = vector.broadcast %cst_53 : f32 to vector<8x32xf32>
    %c0_54 = arith.constant 0 : index
    %c0_55 = arith.constant 0 : index
    %152 = vector.load %arg8[%c0_54, %c0_55] : memref<32x128xbf16, #tpu.memory_space<vmem>>, vector<32x128xbf16>
    %cst_56 = arith.constant dense<0.000000e+00> : vector<8x128xf32>
    %153 = tpu.matmul %150, %152, %cst_56 {dimension_numbers = #tpu.dot_dimension_numbers<[1], [0], [0], [1], [0, 0, 1, 1], [], []>} : vector<8x32xbf16>, vector<32x128xbf16>, vector<8x128xf32> -> vector<8x128xf32>
    %cst_57 = arith.constant 5.000000e-01 : f32
    %154 = vector.broadcast %cst_57 : f32 to vector<8x128xf32>
    %155 = arith.mulf %154, %153 : vector<8x128xf32>
    %156 = arith.mulf %153, %153 : vector<8x128xf32>
    %157 = arith.mulf %156, %153 : vector<8x128xf32>
    %cst_58 = arith.constant 4.471500e-02 : f32
    %158 = vector.broadcast %cst_58 : f32 to vector<8x128xf32>
    %159 = arith.mulf %158, %157 : vector<8x128xf32>
    %160 = arith.addf %153, %159 : vector<8x128xf32>
    %cst_59 = arith.constant 0.797884583 : f32
    %161 = vector.broadcast %cst_59 : f32 to vector<8x128xf32>
    %162 = arith.mulf %161, %160 : vector<8x128xf32>
    %163 = math.tanh %162 : vector<8x128xf32>
    %cst_60 = arith.constant 1.000000e+00 : f32
    %164 = vector.broadcast %cst_60 : f32 to vector<8x128xf32>
    %165 = arith.addf %164, %163 : vector<8x128xf32>
    %166 = arith.mulf %155, %165 : vector<8x128xf32>
    %167 = arith.truncf %166 : vector<8x128xf32> to vector<8x128xbf16>
    %c0_61 = arith.constant 0 : index
    %c0_62 = arith.constant 0 : index
    %168 = vector.load %arg9[%c0_61, %c0_62] : memref<128x32xbf16, #tpu.memory_space<vmem>>, vector<128x32xbf16>
    %cst_63 = arith.constant dense<0.000000e+00> : vector<8x32xf32>
    %169 = tpu.matmul %167, %168, %cst_63 {dimension_numbers = #tpu.dot_dimension_numbers<[1], [0], [0], [1], [0, 0, 1, 1], [], []>} : vector<8x128xbf16>, vector<128x32xbf16>, vector<8x32xf32> -> vector<8x32xf32>
    %170 = arith.addf %151, %169 : vector<8x32xf32>
    %171 = arith.addf %127, %170 : vector<8x32xf32>
    %172 = vector.shape_cast %171 : vector<8x32xf32> to vector<1x8x32xf32>
    %c0_64 = arith.constant 0 : index
    %c0_65 = arith.constant 0 : index
    %c0_66 = arith.constant 0 : index
    %173 = vector.load %arg10[%c0_64, %c0_65, %c0_66] : memref<1x8x32xf32, #tpu.memory_space<vmem>>, vector<1x8x32xf32>
    tpu.vector_store %arg10[%c0_64, %c0_65, %c0_66], %172 {strides = array<i32>} : memref<1x8x32xf32, #tpu.memory_space<vmem>>, vector<1x8x32xf32>,
    return
  }
  func.func @transform_0(%arg0: i32) -> (i32, i32, i32) {
    %c0_i32 = arith.constant 0 : i32
    %c0_i32_0 = arith.constant 0 : i32
    %c0_i32_1 = arith.constant 0 : i32
    return %arg0, %c0_i32, %c0_i32_0 : i32, i32, i32
  }
  func.func @transform_1(%arg0: i32) -> (i32, i32) {
    %c0_i32 = arith.constant 0 : i32
    %c0_i32_0 = arith.constant 0 : i32
    %c0_i32_1 = arith.constant 0 : i32
    return %c0_i32, %c0_i32_0 : i32, i32
  }
  func.func @transform_2(%arg0: i32) -> (i32, i32) {
    %c0_i32 = arith.constant 0 : i32
    %c0_i32_0 = arith.constant 0 : i32
    %c0_i32_1 = arith.constant 0 : i32
    return %c0_i32, %c0_i32_0 : i32, i32
  }
  func.func @transform_3(%arg0: i32) -> (i32, i32) {
    %c0_i32 = arith.constant 0 : i32
    %c0_i32_0 = arith.constant 0 : i32
    %c0_i32_1 = arith.constant 0 : i32
    return %c0_i32, %c0_i32_0 : i32, i32
  }
  func.func @transform_4(%arg0: i32) -> (i32, i32) {
    %c0_i32 = arith.constant 0 : i32
    %c0_i32_0 = arith.constant 0 : i32
    %c0_i32_1 = arith.constant 0 : i32
    return %c0_i32, %c0_i32_0 : i32, i32
  }
  func.func @transform_5(%arg0: i32) -> (i32, i32) {
    %c0_i32 = arith.constant 0 : i32
    %c0_i32_0 = arith.constant 0 : i32
    %c0_i32_1 = arith.constant 0 : i32
    return %c0_i32, %c0_i32_0 : i32, i32
  }
  func.func @transform_6(%arg0: i32) -> (i32, i32) {
    %c0_i32 = arith.constant 0 : i32
    %c0_i32_0 = arith.constant 0 : i32
    %c0_i32_1 = arith.constant 0 : i32
    return %c0_i32, %c0_i32_0 : i32, i32
  }
  func.func @transform_7(%arg0: i32) -> (i32, i32) {
    %c0_i32 = arith.constant 0 : i32
    %c0_i32_0 = arith.constant 0 : i32
    %c0_i32_1 = arith.constant 0 : i32
    return %c0_i32, %c0_i32_0 : i32, i32
  }
  func.func @transform_8(%arg0: i32) -> (i32, i32) {
    %c0_i32 = arith.constant 0 : i32
    %c0_i32_0 = arith.constant 0 : i32
    %c0_i32_1 = arith.constant 0 : i32
    return %c0_i32, %c0_i32_0 : i32, i32
  }
  func.func @transform_9(%arg0: i32) -> (i32, i32, i32) {
    %c0_i32 = arith.constant 0 : i32
    %c0_i32_0 = arith.constant 0 : i32
    %c0_i32_1 = arith.constant 0 : i32
    return %arg0, %c0_i32, %c0_i32_0 : i32, i32, i32
  }
}

</mosaic_0001>

<bundles_post_ra>
// kernel: tpu_custom_call.1
= control target key start
LH: loop header
LB: loop body
LE: loop exit
PB: predicated region body
PF: predicated region fallthrough
CT: control target
= control target key end

     0   :  { %14 = vsyncpa [#allocation4], 0  ;;  %s1428_s0 = inlined_call_operand.vmem [shape: f32[2,8,32], index: 0, kind: input, shape index: {}]   ;;  %s1429_s1 = inlined_call_operand.vmem [shape: f32[1,32], index: 1, kind: input, shape index: {}]   ;;  %s1430_s2 = inlined_call_operand.vmem [shape: f32[1,32], index: 2, kind: input, shape index: {}]   ;;  %s1431_s3 = inlined_call_operand.vmem [shape: bf16[32,96], index: 3, kind: input, shape index: {}]   ;;  %s1432_s4 = inlined_call_operand.vmem [shape: bf16[32,32], index: 4, kind: input, shape index: {}]   ;;  %s1433_s5 = inlined_call_operand.vmem [shape: f32[1,32], index: 5, kind: input, shape index: {}]   ;;  %s1434_s6 = inlined_call_operand.vmem [shape: f32[1,32], index: 6, kind: input, shape index: {}]   ;;  %s1435_s7 = inlined_call_operand.vmem [shape: bf16[32,128], index: 7, kind: input, shape index: {}]   ;;  %s1436_s8 = inlined_call_operand.vmem [shape: bf16[128,32], index: 8, kind: input, shape index: {}]   ;;  %s1437_s9 = inlined_call_operand.hbm [shape: f32[2,8,32], index: 9, kind: output, shape index: {}]  }
   0x1   :  { %16 = vsyncpa [#allocation4 + $0x1], 0  ;;  %s1226_s30 = smov 0   ;;  %s1228_s10 = smov 0  }
   0x2   :  { %s1230_s11 = smov 0   ;;  %s1232_s12 = smov 0  }
   0x3 LB: > { %s1247_s13 = sadd.s32 4294967295, %s1159_s12   ;;  %s924_s14 = sadd.s32 4294967294, %s1159_s12   ;;  %s1159_s12 = sphi %s1232_s12, %s1443_s12   ;;  %s1155_s11 = sphi %s1230_s11, %s1442_s11   ;;  %s1151_s10 = sphi %s1228_s10, %s1441_s10   ;;  %s1147_s30 = sphi %s1226_s30, %s1440_s30  }
   0x4   : > { %s1251_s15 = sadd.s32 1, %s1159_s12   ;;  %s223_s16 = sadd.s32 1, %s1155_s11 }
   0x5   : > { %s220_s17 = ssub.s32 %s1159_s12, %s1251_s15  ;;  %p233_p0 = scmp.ne.s32.totalorder %s1155_s11, %s1151_s10 }
   0x6   : > { %p221_p1 = scmp.eq.s32.totalorder %s220_s17, 0  ;;  %p234_p2 = scmp.eq.s32.totalorder %s1247_s13, 1 }
   0x7   : > { %p239_p3 = scmp.ne.s32.totalorder %s1151_s10, %s1147_s30  ;;  %p240_p4 = scmp.eq.s32.totalorder %s924_s14, 1 }
   0x8   : > { %s1262_s18 = scalar_select %p221_p1, %s1155_s11, %s223_s16  }
   0x9   : > { %p1264_p5 = por %p234_p2, %p233_p0  ;;  %p1268_p6 = por %p240_p4, %p239_p3 }
   0xa   : > { %p927_p7 = scmp.ge.s32.totalorder %s1159_s12, 1  ;;  %p289_p8 = scmp.lt.s32.totalorder %s1159_s12, 3 }
   0xc   : > { %p290_p9 = pnand %p927_p7, %p289_p8 }
   0xd   : > { %p324_p10 = scmp.lt.s32.totalorder (!%p290_p9), %s1247_s13, 1  ;;  %s1163_s23 = smov (!%p290_p9), 64  }
   0xe   : > { %293 = sbr.rel (%p290_p9) target bundleno = 2321 (0x911), region = 56  ;;  %s1164_s24 = smov (!%p290_p9), 96  }
   0xf   : > { %s1166_s26 = smov (!%p290_p9), 80   ;;  %s1167_s27 = smov (!%p290_p9), 120  }
  0x10   : > { %s1168_s28 = smov (!%p290_p9), 104   ;;  %s1169_s29 = smov (!%p290_p9), 112  }
  0x11   : > { %s1170_s14 = smov (!%p290_p9), 40   ;;  %s1171_s16 = smov (!%p290_p9), 48  }
  0x12   : > { %s1172_s17 = smov (!%p290_p9), 56  }
  0x13   : > { %s325_s21 = scalar_select %p324_p10, %s1247_s13, 1  ;;  %vm330_vm0 = vcmask 261120   ;;  %v1161_v2 = vmov 32.0   ;;  %v1002_v14 = vld [vmem:[%s1431_s3 + $0x8] sm:$0xff]  ;;  %v1001_v15 = vld [vmem:[%s1431_s3] sm:$0xff]  ;;  %vm452_vm5 = vcmask 1043456   ;;  %v404_v47 = vlaneseq }
  0x14   : > { %1073 = vrcp.f32 %v1161_v2  ;;  %396 = vmatpush.bf16.msra.mxu0 %v1002_v14  ;;  %v1069_v25 = vld [vmem:[%s1429_s1] ss:$0 sm:$0xff]  ;;  %vm414_vm6 = vcmask 64512   ;;  %vm532_vm8 = vcmask 130112   ;;  %vm595_vm9 = vcmask 195712  }
  0x15   : > { %s929_s22 = sshll.u32 %s325_s21, 3  ;;  %v1070_v28 = vld [vmem:[%s1430_s2] ss:$0 sm:$0xff]  ;;  %v405_v48 = vshrl.u32 %v404_v47, 7  ;;  %v407_v49 = vand.u32 127, %v404_v47  ;;  %s1173_s21 = smov 16  }
  0x16   : > { %s327_s25 = scalar_lea.vmem %s1428_s0, %s929_s22  ;;  %s1162_s22 = smov 88   ;;  %vm658_vm10 = vcmask 261312  }
  0x17   : > { %v1279_v0 = vld [vmem:[%s327_s25] sm:$0xff]  ;;  %s1165_s25 = smov 72   ;;  %vm408_vm7 = vcmp.le.s32.totalorder %v407_v49, %v405_v48 }
  0x18   : > { %v331_v1 = vsel %vm330_vm0, %v1279_v0, 0.0  ;;  %397 = vmatpush.bf16.msra.mxu0 %v1001_v15 }
  0x19   : > { %332 = vadd.xlane.f32.xlu0 %v331_v1 }
  0x1a   : > { %v1074_v3 = vpop.eup %1073 }
  0x1b   : > { %v335_v4 = vmul.f32 32.0, %v1074_v3  ;;  %vm339_vm1 = vweird.f32 %v1074_v3 }
  0x1d   : > { %v336_v5 = vsub.f32 1.0, %v335_v4 }
  0x1f   : > { %v337_v6 = vmul.f32 %v1074_v3, %v336_v5 }
  0x21   : > { %v338_v7 = vadd.f32 %v1074_v3, %v337_v6 }
  0x23   : > { %v1283_v8 = vsel %vm339_vm1, %v1074_v3, %v338_v7 }
  0x8c   : > { %v333_v9 = vpop.xlane.xlu0 %332 }
  0x8d   : > { %v341_v10 = vmul.f32 %v1283_v8, %v333_v9 }
  0x8f   : > { %v342_v11 = vsub.f32 %v1279_v0, %v341_v10 }
  0x91   : > { %v343_v12 = vmul.f32 %v342_v11, %v342_v11 }
  0x93   : > { %v344_v13 = vsel %vm330_vm0, %v343_v12, 0.0 }
  0x94   : > { %345 = vadd.xlane.f32.xlu0 %v344_v13 }
 0x107   : > { %v346_v16 = vpop.xlane.xlu0 %345 }
 0x108   : > { %v347_v17 = vmul.f32 %v346_v16, %v1283_v8 }
 0x10a   : > { %v348_v18 = vadd.f32 1e-05, %v347_v17 }
 0x10c   : > { %1075 = vrsqrt.f32 %v348_v18  ;;  %vm355_vm3 = vweird.f32 %v348_v18 }
 0x112   : > { %v1076_v19 = vpop.eup %1075 }
 0x113   : > { %v350_v20 = vmul.f32 %v1076_v19, %v348_v18  ;;  %vm356_vm2 = vweird.f32 %v1076_v19 }
 0x114   : > { %vm357_vm4 = vmor %vm355_vm3, %vm356_vm2 }
 0x115   : > { %v351_v21 = vmul.f32 %v1076_v19, %v350_v20 }
 0x117   : > { %v352_v22 = vmul.f32 0.5, %v351_v21 }
 0x119   : > { %v353_v23 = vsub.f32 1.5, %v352_v22 }
 0x11b   : > { %v354_v24 = vmul.f32 %v1076_v19, %v353_v23 }
 0x11d   : > { %v358_v26 = vsel %vm357_vm4, %v1076_v19, %v354_v24 }
 0x11e   : > { %v359_v27 = vmul.f32 %v358_v26, %v342_v11 }
 0x120   : > { %v364_v29 = vmul.f32 %v1069_v25, %v359_v27 }
 0x122   : > { %v369_v30 = vadd.f32 %v1070_v28, %v364_v29 }
 0x124   : > { %v370_v31 = vpack.c.bf16 %v369_v30, %v369_v30 }
 0x126   : > { %938 = vmatmul.msk.bf16.vlgmr.msra.gmra.mxu0 %vm330_vm0, %v370_v31 }
 0x1a3   : > { %v399_v32 = vpop.f32.mrf.mxu0 }
 0x1a4   : > { %v1302_v33 = vpack.c.bf16 %v399_v32, %v399_v32  ;;  %v403_v41 = vmul.f32 0.35355338, %v399_v32 }
 0x1a6   : > { %473 = vrot.lane.b32.xlu0 %v1302_v33, %s1162_s22  ;;  %447 = vrot.lane.b32.xlu2 %v1302_v33, %s1163_s23  ;;  %v409_v42 = vpack.c.bf16 %v403_v41, %v403_v41  ;;  %s1174_s22 = smov 8   ;;  %s1175_s23 = smov 24  }
 0x1a7   : > { %412 = vrot.lane.b32.xlu1 %v1302_v33, %s1164_s24 }
 0x1ab   : > { %v401_v34 = vpop.f32.mrf.mxu0 }
 0x1ae   : > { %599 = vrot.lane.b32.xlu0 %v1302_v33, %s1165_s25 }
 0x1b6   : > { %536 = vrot.lane.b32.xlu0 %v1302_v33, %s1166_s26 }
 0x200   : > { %v448_v35 = vpop.permute.xlu2 %447 }
 0x201   : > { %v454_v36 = vsel %vm452_vm5, %v448_v35, 0 }
 0x202   : > { %463 = vmatpush.bf16.msra.mxu2 %v454_v36 }
 0x218   : > { %v474_v37 = vpop.permute.xlu0 %473 }
 0x219   : > { %v413_v38 = vpop.permute.xlu1 %412  ;;  %v479_v39 = vsel %vm414_vm6, %v474_v37, 0 }
 0x21a   : > { %v419_v40 = vsel %vm414_vm6, %v413_v38, 0  ;;  %488 = vmatpush.bf16.xpose.msrb.mxu2 %v479_v39 }
 0x21b   : > { %428 = vmatpush.bf16.xpose.msra.mxu1 %v419_v40 }
 0x220   : > { %v600_v43 = vpop.permute.xlu0 %599 }
 0x221   : > { %v605_v44 = vsel %vm414_vm6, %v600_v43, 0 }
 0x222   : > { %939 = vmatmul.msk.bf16.vlgmr.msra.gmra.mxu1 %vm414_vm6, %v409_v42  ;;  %614 = vmatpush.bf16.xpose.msra.mxu3 %v605_v44 }
 0x228   : > { %v537_v45 = vpop.permute.xlu0 %536 }
 0x229   : > { %v542_v46 = vsel %vm414_vm6, %v537_v45, 0 }
 0x22a   : > { %551 = vmatpush.bf16.xpose.msrb.mxu0 %v542_v46 }
 0x29f   : > { %v430_v50 = vpop.f32.mrf.mxu1 }
 0x2a0   : > { %v434_v51 = vsel %vm408_vm7, %v430_v50, -1e+30 }
 0x2a1   : > { %v435_v52 = vsel %vm414_vm6, %v434_v51, -inf }
 0x2a2   : > { %436 = vmax.xlane.f32.xlu1 %v435_v52 }
 0x2a7   : > { %v432_v53 = vpop.f32.mrf.mxu1 }
 0x315   : > { %v437_v54 = vpop.xlane.xlu1 %436 }
 0x316   : > { %v438_v55 = vsub.f32 %v434_v51, %v437_v54 }
 0x318   : > { %v439_v56 = vmul.f32 1.442695, %v438_v55 }
 0x31a   : > { %1077 = vpow2.f32 %v439_v56 }
 0x320   : > { %v1078_v57 = vpop.eup %1077 }
 0x321   : > { %v441_v58 = vsel %vm414_vm6, %v1078_v57, 0.0 }
 0x322   : > { %442 = vadd.xlane.f32.xlu2 %v441_v58 }
 0x33a   : > { %471 = vrot.lane.b32.xlu2 %v409_v42, %s1167_s27 }
 0x342   : > { %597 = vrot.lane.b32.xlu2 %v409_v42, %s1168_s28  ;;  %s321_s28 = sand.u32 1, %s1151_s10  }
 0x343   : > { %s850_s25 = scalar_lea.sflag [#allocation4], %s321_s28 }
 0x34a   : > { %534 = vrot.lane.b32.xlu2 %v409_v42, %s1169_s29  ;;  %s998_s29 = sshll.u32 %s1247_s13, 3 }
 0x395   : > { %v443_v59 = vpop.xlane.xlu2 %442 }
 0x396   : > { %1079 = vrcp.f32 %v443_v59 }
 0x39c   : > { %v1080_v60 = vpop.eup %1079 }
 0x39d   : > { %v472_v61 = vpop.permute.xlu2 %471  ;;  %v445_v62 = vmul.f32 %v1080_v60, %v1078_v57  ;;  %v1004_v57 = vld [vmem:[%s1432_s4 + $0x8] sm:$0xff]  ;;  %v1003_v60 = vld [vmem:[%s1432_s4] sm:$0xff] }
 0x39e   : > { %687 = vmatpush.bf16.msra.mxu0 %v1004_v57 }
 0x39f   : > { %v446_v63 = vpack.c.bf16 %v445_v62, %v445_v62 }
 0x3a1   : > { %940 = vmatmul.msk.bf16.vlgmr.msra.gmra.mxu2 %vm414_vm6, %v446_v63 }
 0x3a2   : > { %688 = vmatpush.bf16.msra.mxu0 %v1003_v60 }
 0x3a5   : > { %v598_v1 = vpop.permute.xlu2 %597 }
 0x3a6   : > { %945 = vmatmul.msk.bf16.vlgmr.msra.gmra.mxu3 %vm414_vm6, %v598_v1 }
 0x3ad   : > { %v535_v2 = vpop.permute.xlu2 %534 }
 0x3ae   : > { %943 = vmatmul.msk.bf16.vlgmr.msrb.gmra.mxu0 %vm414_vm6, %v535_v2 }
 0x3b1   : > { %941 = vmatmul.msk.bf16.vlgmr.msrb.gmra.mxu2 %vm414_vm6, %v472_v61 }
 0x424   : > { %v465_v3 = vpop.f32.mrf.mxu2 }
 0x425   : > { %469 = vst.msk [vmem:[#allocation2] sm:$0xff] %vm414_vm6, %v465_v3 }
 0x429   : > { %v616_v4 = vpop.f32.mrf.mxu3 }
 0x42a   : > { %v620_v5 = vsel %vm408_vm7, %v616_v4, -1e+30 }
 0x42b   : > { %v553_v6 = vpop.f32.mrf.mxu0  ;;  %v621_v7 = vsel %vm414_vm6, %v620_v5, -inf }
 0x42c   : > { %v557_v9 = vsel %vm408_vm7, %v553_v6, -1e+30  ;;  %v467_v10 = vpop.f32.mrf.mxu2  ;;  %622 = vmax.xlane.f32.xlu0 %v621_v7 }
 0x42d   : > { %v558_v11 = vsel %vm414_vm6, %v557_v9, -inf }
 0x42e   : > { %559 = vmax.xlane.f32.xlu2 %v558_v11  ;;  %v1006_v11 = vld [vmem:[%s1435_s7 + $0x8] sm:$0xff] }
 0x431   : > { %v618_v12 = vpop.f32.mrf.mxu3 }
 0x432   : > { %v1014_v12 = vld [vmem:[%s1436_s8 + $0x38] sm:$0xff] }
 0x433   : > { %v555_v13 = vpop.f32.mrf.mxu0  ;;  %834 = vmatpush.bf16.msrb.mxu3 %v1014_v12 }
 0x434   : > { %v490_v14 = vpop.f32.mrf.mxu2 }
 0x435   : > { %v494_v15 = vsel %vm408_vm7, %v490_v14, -1e+30 }
 0x436   : > { %v495_v16 = vsel %vm414_vm6, %v494_v15, -inf }
 0x437   : > { %496 = vmax.xlane.f32.xlu1 %v495_v16 }
 0x43c   : > { %v492_v17 = vpop.f32.mrf.mxu2 }
 0x446   : > { %633 = vrot.lane.b32.xlu2 %v1302_v33, %s1170_s14  ;;  %s928_s14 = sshll.u32 %s321_s28, 3 }
 0x49f   : > { %v623_v28 = vpop.xlane.xlu0 %622 }
 0x4a0   : > { %v624_v29 = vsub.f32 %v620_v5, %v623_v28 }
 0x4a1   : > { %v560_v18 = vpop.xlane.xlu2 %559 }
 0x4a2   : > { %v561_v19 = vsub.f32 %v557_v9, %v560_v18  ;;  %v625_v30 = vmul.f32 1.442695, %v624_v29  ;;  %v1012_v29 = vld [vmem:[%s1436_s8 + $0x28] sm:$0xff] }
 0x4a4   : > { %v562_v20 = vmul.f32 1.442695, %v561_v19 }
 0x4a6   : > { %1081 = vpow2.f32 %v562_v20 }
 0x4a9   : > { %v634_v41 = vpop.permute.xlu2 %633 }
 0x4aa   : > { %v497_v21 = vpop.xlane.xlu1 %496  ;;  %v639_v45 = vsel %vm452_vm5, %v634_v41, 0 }
 0x4ab   : > { %v498_v22 = vsub.f32 %v494_v15, %v497_v21  ;;  %v1013_v15 = vld [vmem:[%s1436_s8 + $0x30] sm:$0xff] }
 0x4ac   : > { %v1082_v23 = vpop.eup %1081  ;;  %835 = vmatpush.bf16.msrb.mxu3 %v1013_v15 }
 0x4ad   : > { %v499_v24 = vmul.f32 1.442695, %v498_v22  ;;  %v564_v25 = vsel %vm414_vm6, %v1082_v23, 0.0 }
 0x4ae   : > { %565 = vadd.xlane.f32.xlu0 %v564_v25  ;;  %v1072_v25 = vld [vmem:[%s1434_s6] ss:$0 sm:$0xff] }
 0x4af   : > { %1083 = vpow2.f32 %v499_v24 }
 0x4b0   : > { %1085 = vpow2.f32 %v625_v30  ;;  %836 = vmatpush.bf16.msrb.mxu3 %v1012_v29  ;;  %v1011_v30 = vld [vmem:[%s1436_s8 + $0x20] sm:$0xff] }
 0x4b4   : > { %837 = vmatpush.bf16.msrb.mxu3 %v1011_v30 }
 0x4b5   : > { %v1084_v26 = vpop.eup %1083 }
 0x4b6   : > { %v501_v27 = vsel %vm414_vm6, %v1084_v26, 0.0  ;;  %v1086_v31 = vpop.eup %1085 }
 0x4b7   : > { %502 = vadd.xlane.f32.xlu1 %v501_v27  ;;  %v627_v32 = vsel %vm414_vm6, %v1086_v31, 0.0 }
 0x4c2   : > { %570 = vrot.lane.b32.xlu0 %v1302_v33, %s1171_s16 }
 0x4d0   : > { %507 = vrot.lane.b32.xlu1 %v1302_v33, %s1172_s17 }
 0x4fa   : > { %628 = vadd.xlane.f32.xlu1 %v627_v32  ;;  %v1009_v32 = vld [vmem:[%s1436_s8 + $0x10] sm:$0xff] }
 0x521   : > { %v566_v34 = vpop.xlane.xlu0 %565 }
 0x522   : > { %1087 = vrcp.f32 %v566_v34  ;;  %v1008_v34 = vld [vmem:[%s1436_s8 + $0x8] sm:$0xff] }
 0x528   : > { %v1088_v35 = vpop.eup %1087 }
 0x529   : > { %v568_v36 = vmul.f32 %v1088_v35, %v1082_v23  ;;  %v1007_v35 = vld [vmem:[%s1436_s8] sm:$0xff] }
 0x52a   : > { %v503_v38 = vpop.xlane.xlu1 %502 }
 0x52b   : > { %v569_v40 = vpack.c.bf16 %v568_v36, %v568_v36  ;;  %1089 = vrcp.f32 %v503_v38 }
 0x531   : > { %v1090_v33 = vpop.eup %1089 }
 0x532   : > { %v505_v42 = vmul.f32 %v1090_v33, %v1084_v26 }
 0x534   : > { %v571_v37 = vpop.permute.xlu0 %570  ;;  %v506_v46 = vpack.c.bf16 %v505_v42, %v505_v42 }
 0x535   : > { %v576_v39 = vsel %vm452_vm5, %v571_v37, 0 }
 0x536   : > { %585 = vmatpush.bf16.msrb.mxu1 %v576_v39 }
 0x539   : > { %944 = vmatmul.msk.bf16.vlgmr.msrb.gmra.mxu1 %vm414_vm6, %v569_v40 }
 0x53a   : > { %753 = vmatpush.bf16.msra.mxu1 %v1006_v11 }
 0x542   : > { %v508_v43 = vpop.permute.xlu1 %507 }
 0x543   : > { %v513_v44 = vsel %vm452_vm5, %v508_v43, 0 }
 0x544   : > { %522 = vmatpush.bf16.msra.mxu2 %v513_v44 }
 0x547   : > { %942 = vmatmul.msk.bf16.vlgmr.msra.gmra.mxu2 %vm414_vm6, %v506_v46 }
 0x548   : > { %648 = vmatpush.bf16.msrb.mxu2 %v639_v45 }
 0x56d   : > { %v629_v47 = vpop.xlane.xlu1 %628 }
 0x56e   : > { %1091 = vrcp.f32 %v629_v47 }
 0x574   : > { %v1092_v48 = vpop.eup %1091 }
 0x575   : > { %v631_v49 = vmul.f32 %v1092_v48, %v1086_v31  ;;  %v1010_v31 = vld [vmem:[%s1436_s8 + $0x18] sm:$0xff] }
 0x576   : > { %838 = vmatpush.bf16.msrb.mxu3 %v1010_v31 }
 0x577   : > { %v632_v50 = vpack.c.bf16 %v631_v49, %v631_v49 }
 0x579   : > { %946 = vmatmul.msk.bf16.vlgmr.msrb.gmra.mxu2 %vm414_vm6, %v632_v50 }
 0x57a   : > { %839 = vmatpush.bf16.msrb.mxu3 %v1009_v32 }
 0x57e   : > { %840 = vmatpush.bf16.msrb.mxu3 %v1008_v34 }
 0x582   : > { %841 = vmatpush.bf16.msrb.mxu3 %v1007_v35 }
 0x5b6   : > { %v587_v51 = vpop.f32.mrf.mxu1 }
 0x5b7   : > { %592 = vrot.lane.b32.xlu0 %v587_v51, %s1173_s21  ;;  %s860_s21 = scalar_lea.hbm %s1437_s9, %s998_s29 }
 0x5b8   : > { %s864_s24 = sshll.u32 %s860_s21, 4  ;;  %s865_s24 = int_to_ptr.hbm [resolvable:$true] %s864_s24 }
 0x5b9   : > { %s1111_s26 = sshra.s32 %s865_s24, 4  ;;  %s1112_s26 = int_to_ptr.hbm [resolvable:$true] %s1111_s26 }
 0x5ba   : > { %s1113_s13 = scalar_lea.hbm %s1112_s26, 8  ;;  %p1118_p0 = scmp.lt.s32.totalorder %s1112_s26, %s1437_s9 }
 0x5bb   : > { %p1114_p11 = scmp.ne.s32.totalorder %s1112_s26, %s1113_s13 }
 0x5bd   : > { %p1115_p12 = pnand %p1114_p11, %p1264_p5 }
 0x5be   : > { %v589_v52 = vpop.f32.mrf.mxu1 }
 0x5bf   : > { %p1116_p13 = pneg %p1115_p12 }
 0x5ca   : > { %v524_v53 = vpop.f32.mrf.mxu2 }
 0x5cb   : > { %529 = vrot.lane.b32.xlu2 %v524_v53, %s1174_s22  ;;  %s323_s22 = scalar_lea.vmem [#allocation3], %s928_s14  ;;  %s1117_s14 = scalar_lea.hbm %s1437_s9, 16 }
 0x5cc   : > { %p1119_p1 = scmp.lt.s32.totalorder %s1117_s14, %s1113_s13 }
 0x5ce   : > { %p1120_p2 = por %p1119_p1, %p1118_p0 }
 0x5d0   : > { %p1121_p3 = pnand %p1120_p2, %p1116_p13 }
 0x5d2   : > { %v526_v54 = vpop.f32.mrf.mxu2 }
 0x5fc   : > { %v650_v55 = vpop.f32.mrf.mxu2 }
 0x5fd   : > { %655 = vrot.lane.b32.xlu2 %v650_v55, %s1175_s23  ;;  %s862_s23 = sshll.u32 %s323_s22, 4  ;;  %s863_s23 = int_to_ptr.vmem [resolvable:$true] %s862_s23 }
 0x604   : > { %v652_v56 = vpop.f32.mrf.mxu2 }
 0x625   : > { %v530_v58 = vpop.permute.xlu2 %529 }
 0x626   : > { %533 = vst.msk [vmem:[#allocation2] sm:$0xff] %vm532_vm8, %v530_v58 }
 0x629   : > { %v593_v59 = vpop.permute.xlu0 %592 }
 0x62a   : > { %596 = vst.msk [vmem:[#allocation2] sm:$0xff] %vm595_vm9, %v593_v59 }
 0x657   : > { %v656_v61 = vpop.permute.xlu2 %655 }
 0x658   : > { %659 = vst.msk [vmem:[#allocation2] sm:$0xff] %vm658_vm10, %v656_v61 }
 0x65f   : > { %v660_v62 = vld [vmem:[#allocation2] sm:$0xff] }
 0x660   : > { %v661_v63 = vpack.c.bf16 %v660_v62, %v660_v62 }
 0x662   : > { %955 = vmatmul.msk.bf16.vlgmr.msra.gmra.mxu0 %vm330_vm0, %v661_v63 }
 0x6df   : > { %v690_v1 = vpop.f32.mrf.mxu0 }
 0x6e0   : > { %v1349_v2 = vadd.f32 %v690_v1, %v1279_v0  ;;  %v1005_v0 = vld [vmem:[%s1435_s7] sm:$0xff] }
 0x6e1   : > { %754 = vmatpush.bf16.msra.mxu1 %v1005_v0 }
 0x6e2   : > { %v695_v3 = vsel %vm330_vm0, %v1349_v2, 0.0 }
 0x6e3   : > { %696 = vadd.xlane.f32.xlu0 %v695_v3 }
 0x6e7   : > { %v692_v4 = vpop.f32.mrf.mxu0 }
 0x756   : > { %v697_v5 = vpop.xlane.xlu0 %696 }
 0x757   : > { %v698_v6 = vmul.f32 %v697_v5, %v1283_v8 }
 0x759   : > { %v699_v7 = vsub.f32 %v1349_v2, %v698_v6 }
 0x75b   : > { %v700_v9 = vmul.f32 %v699_v7, %v699_v7 }
 0x75d   : > { %v701_v10 = vsel %vm330_vm0, %v700_v9, 0.0 }
 0x75e   : > { %702 = vadd.xlane.f32.xlu1 %v701_v10 }
 0x7d1   : > { %v703_v13 = vpop.xlane.xlu1 %702 }
 0x7d2   : > { %v704_v14 = vmul.f32 %v703_v13, %v1283_v8  ;;  %v1071_v8 = vld [vmem:[%s1433_s5] ss:$0 sm:$0xff] }
 0x7d4   : > { %v705_v16 = vadd.f32 1e-05, %v704_v14 }
 0x7d6   : > { %1093 = vrsqrt.f32 %v705_v16  ;;  %vm712_vm12 = vweird.f32 %v705_v16 }
 0x7dc   : > { %v1094_v17 = vpop.eup %1093 }
 0x7dd   : > { %v707_v18 = vmul.f32 %v1094_v17, %v705_v16  ;;  %vm713_vm11 = vweird.f32 %v1094_v17 }
 0x7de   : > { %vm714_vm13 = vmor %vm712_vm12, %vm713_vm11 }
 0x7df   : > { %v708_v19 = vmul.f32 %v1094_v17, %v707_v18 }
 0x7e1   : > { %v709_v20 = vmul.f32 0.5, %v708_v19 }
 0x7e3   : > { %v710_v21 = vsub.f32 1.5, %v709_v20 }
 0x7e5   : > { %v711_v22 = vmul.f32 %v1094_v17, %v710_v21 }
 0x7e7   : > { %v715_v23 = vsel %vm714_vm13, %v1094_v17, %v711_v22 }
 0x7e8   : > { %v716_v24 = vmul.f32 %v715_v23, %v699_v7 }
 0x7ea   : > { %v721_v26 = vmul.f32 %v1071_v8, %v716_v24 }
 0x7ec   : > { %v726_v27 = vadd.f32 %v1072_v25, %v721_v26 }
 0x7ee   : > { %v727_v28 = vpack.c.bf16 %v726_v27, %v726_v27 }
 0x7f0   : > { %964 = vmatmul.msk.bf16.vlgmr.msra.gmra.mxu1 %vm330_vm0, %v727_v28 }
 0x86d   : > { %v756_v36 = vpop.f32.mrf.mxu1 }
 0x86e   : > { %v761_v37 = vmul.f32 %v756_v36, %v756_v36  ;;  %v760_v43 = vmul.f32 0.5, %v756_v36 }
 0x870   : > { %v762_v38 = vmul.f32 %v761_v37, %v756_v36 }
 0x872   : > { %v763_v39 = vmul.f32 0.044715, %v762_v38 }
 0x874   : > { %v764_v40 = vadd.f32 %v763_v39, %v756_v36 }
 0x875   : > { %v758_v33 = vpop.f32.mrf.mxu1 }
 0x876   : > { %v765_v41 = vmul.f32 0.7978846, %v764_v40 }
 0x878   : > { %1095 = vtanh.f32 %v765_v41 }
 0x87e   : > { %v1096_v42 = vpop.eup %1095 }
 0x87f   : > { %v767_v44 = vadd.f32 1.0, %v1096_v42 }
 0x881   : > { %v768_v45 = vmul.f32 %v767_v44, %v760_v43 }
 0x883   : > { %v769_v46 = vpack.c.bf16 %v768_v45, %v768_v45 }
 0x885   : > { %842 = vmatmul.bf16.vlgmr.msrb.gmra.mxu3 %v769_v46 }
 0x908   : > { %v843_v47 = vpop.f32.mrf.mxu3 }
 0x909   : > { %v847_v48 = vadd.f32 %v843_v47, %v1349_v2 }
 0x90b   : > { %848 = vst.msk [vmem:[%s323_s22] sm:$0xff] %vm330_vm0, %v847_v48 }
 0x90c   : > { %1124 = shalt.err (!%p1121_p3)
}
 0x90d   : > { %1015 = dma.vmem_to_hbm [thread:$0]  (%p1264_p5), %s863_s23, 128, %s865_s24, %s850_s25  }
 0x910   : > { %v845_v49 = vpop.f32.mrf.mxu3 }
 0x911 PF: > { %p1021_p4 = scmp.ge.s32.totalorder %s1159_s12, 2  ;;  %s876_s28 = sand.u32 1, %s1147_s30  }
 0x912   : > { %s877_s21 = scalar_lea.sflag [#allocation4], %s876_s28 }
 0x913   : > { %p1018_p7 = pnand %p1021_p4, %p1268_p6 }
 0x915   : > { %p1019_p8 = pneg %p1018_p7 }
 0x917   : > { %1142 = dma.done.wait (%p1019_p8), %s877_s21, 128  }
 0x918   : > { %1144 = vsyncadd (%p1019_p8), %s877_s21, 4294967168  ;;  %p19_p9 = scmp.ge.s32.totalorder %s1251_s15, 4   ;;  %s1440_s30 = smov %s1151_s10 }
 0x919   : > { %s1441_s10 = smov %s1155_s11  ;;  %s1442_s11 = smov %s1262_s18 }
 0x91a   : > { %s1443_s12 = smov %s1251_s15  ;;  %21 = sbr.rel (!%p19_p9) target bundleno = 3 (0x3), region = 91 }
 0x91f   :  { %883 = vsyncpa [#allocation4], 1 }
 0x920   :  { %885 = vsyncpa [#allocation4 + $0x1], 1 }

</bundles_post_ra>
